<compile_context>
chip_gen: v5e
topology: v5e:2x2
jax: 0.10.0
libtpu: 0.0.40
codegen_flags: <defaults>
</compile_context>

<pallas_src>
import functools

import jax
import jax.numpy as jnp
import numpy as np
from jax import lax
from jax.experimental import pallas as pl
from jax.experimental.pallas import tpu as pltpu


# ----------------------------------------------------------------------------
# Kernel 1: token-embedding gather + max pooling over the token axis.
# Table resident in VMEM; ids scalar-prefetched into SMEM; each grid step
# gathers rows*T table rows and writes one (rows, H) output block.
# ----------------------------------------------------------------------------
def _embed_maxpool_kernel(ids_ref, emb_ref, out_ref, *, rows, tokens):
    blk = pl.program_id(0)
    base = blk * rows * tokens
    pooled = []
    for r in range(rows):                      # static loops: rows*tokens gathers
        idx0 = ids_ref[base + r * tokens]
        acc = emb_ref[pl.ds(idx0, 1), :]       # (1, H) dynamic row gather
        for t in range(1, tokens):
            idx = ids_ref[base + r * tokens + t]
            acc = jnp.maximum(acc, emb_ref[pl.ds(idx, 1), :])
        pooled.append(acc)
    out_ref[...] = jnp.concatenate(pooled, axis=0)   # (rows, H) lane-dense store


def embed_maxpool(ids, emb, *, rows_per_block=8):
    """ids: [B,S,T] int32, emb: [V,H] f32 -> [B,S,H] f32 (== amax over tokens)."""
    B, S, T = ids.shape
    V, H = emb.shape
    n = B * S
    n_pad = rows_per_block * pl.cdiv(n, rows_per_block)
    ids_flat = ids.reshape(n, T).astype(jnp.int32)
    if n_pad != n:
        ids_flat = jnp.pad(ids_flat, ((0, n_pad - n), (0, 0)))
    ids_1d = ids_flat.reshape(n_pad * T)       # 1-D SMEM layout (avoids 2-D padding)

    # TODO(synk): for production vocab sizes, gate this VMEM-resident-table path
    # on V*H*4 fitting the per-core VMEM budget (~<40 MiB on v7x, ~<90 MiB on
    # v5e/v6e; raise vmem_limit_bytes above the 32 MiB default) and fall back to
    # a chunked row-gather DMA otherwise.
    out = pl.pallas_call(
        functools.partial(_embed_maxpool_kernel, rows=rows_per_block, tokens=T),
        out_shape=jax.ShapeDtypeStruct((n_pad, H), emb.dtype),
        grid_spec=pltpu.PrefetchScalarGridSpec(
            num_scalar_prefetch=1,
            grid=(n_pad // rows_per_block,),
            in_specs=[pl.BlockSpec((V, H), lambda i, ids_ref: (0, 0))],  # resident table
            out_specs=pl.BlockSpec((rows_per_block, H), lambda i, ids_ref: (i, 0)),
        ),
        compiler_params=pltpu.CompilerParams(dimension_semantics=("parallel",)),
    )(ids_1d, emb)
    return out[:n].reshape(B, S, H)


# ----------------------------------------------------------------------------
# Kernel 2: fused ClassificationHead + activations.
#   * per-statement head: dense -> tanh -> out_proj (out_proj via VPU lane-sum)
#   * GRU pooling: input matmul hoisted, recurrence as a static in-kernel loop
#   * function head: func_dense -> tanh -> func_out_proj (VPU) -> softmax
#   * sigmoid fused for the statement logits
# TODO(synk): at production B*S / S, tile the per-statement head over 128-row
# blocks (parallel grid axis) and switch the recurrence to lax.fori_loop.
# ----------------------------------------------------------------------------
def _classifier_kernel(x_ref, w1_ref, b1_ref, w2r_ref, b2_ref,
                       wih_ref, whh_ref, bih_ref, bhh_ref,
                       fw1_ref, fb1_ref, fw2r_ref, fb2_ref,
                       probs_ref, funcp_ref, *, batch, seq):
    x = x_ref[...]                                   # [B*S, H]
    H = x.shape[-1]

    # ---- statement head -----------------------------------------------------
    h1 = jnp.tanh(jnp.dot(x, w1_ref[...], preferred_element_type=jnp.float32)
                  + b1_ref[...])
    logits = jnp.sum(h1 * w2r_ref[...], axis=-1, keepdims=True) + b2_ref[...]  # [B*S,1]
    probs_ref[...] = jax.nn.sigmoid(logits).astype(probs_ref.dtype)

    # ---- GRU pooling (h_0 = 0) ----------------------------------------------
    # Hoisted input-to-hidden matmul: one [B*S, H] x [H, 3H] MXU pass.
    gi_all = (jnp.dot(x, wih_ref[...], preferred_element_type=jnp.float32)
              + bih_ref[...])                        # [B*S, 3H]
    whh = whh_ref[...]
    bhh = bhh_ref[...]
    h = jnp.zeros((batch, H), jnp.float32)
    for s in range(seq):                             # static trip count (S small)
        gi = jnp.concatenate(
            [gi_all[b * seq + s:b * seq + s + 1, :] for b in range(batch)], axis=0)
        gh = jnp.dot(h, whh, preferred_element_type=jnp.float32) + bhh
        r = jax.nn.sigmoid(gi[:, 0:H] + gh[:, 0:H])
        z = jax.nn.sigmoid(gi[:, H:2 * H] + gh[:, H:2 * H])
        n = jnp.tanh(gi[:, 2 * H:3 * H] + r * gh[:, 2 * H:3 * H])
        h = (1.0 - z) * n + z * h                    # [B, H]

    # ---- function head + softmax ---------------------------------------------
    f = jnp.tanh(jnp.dot(h, fw1_ref[...], preferred_element_type=jnp.float32)
                 + fb1_ref[...])                     # [B, H]
    fw2 = fw2r_ref[...]                              # [2, H]  (out, in)
    l0 = jnp.sum(f * fw2[0:1, :], axis=-1, keepdims=True)
    l1 = jnp.sum(f * fw2[1:2, :], axis=-1, keepdims=True)
    func_logits = jnp.concatenate([l0, l1], axis=-1) + fb2_ref[...]     # [B, 2]
    m = jnp.max(func_logits, axis=-1, keepdims=True)
    e = jnp.exp(func_logits - m)
    funcp_ref[...] = (e / jnp.sum(e, axis=-1, keepdims=True)).astype(funcp_ref.dtype)


def classifier_head(rep, p):
    """rep: [B,S,H] -> (probs [B,S], func_probs [B,2]) fully fused."""
    B, S, H = rep.shape
    probs_flat, func_probs = pl.pallas_call(
        functools.partial(_classifier_kernel, batch=B, seq=S),
        out_shape=(jax.ShapeDtypeStruct((B * S, 1), jnp.float32),
                   jax.ShapeDtypeStruct((B, 2), jnp.float32)),
    )(rep.reshape(B * S, H),
      p["cls_dense_w"], p["cls_dense_b"], p["cls_out_w_row"], p["cls_out_b"],
      p["pool_wih"], p["pool_whh"], p["pool_bih"], p["pool_bhh"],
      p["func_dense_w"], p["func_dense_b"], p["func_out_w_rows"], p["func_out_b"])
    return probs_flat.reshape(B, S), func_probs


# ----------------------------------------------------------------------------
# Kernel 3: CrossAttention (dependent class).  q/k/v/o projections (no bias),
# negated scores, softmax, weighted sum.  Dropout is eval-mode identity.
# Scores via dot_general contracting on the feature axis (no explicit k.T).
# ----------------------------------------------------------------------------
def _cross_attn_kernel(hs_ref, kv_ref, wq_ref, wk_ref, wv_ref, wo_ref,
                       out_ref, attw_ref):
    q = jnp.dot(hs_ref[...], wq_ref[...], preferred_element_type=jnp.float32)
    k = jnp.dot(kv_ref[...], wk_ref[...], preferred_element_type=jnp.float32)
    v = jnp.dot(kv_ref[...], wv_ref[...], preferred_element_type=jnp.float32)
    scores = -lax.dot_general(q, k, (((1,), (1,)), ((), ())),
                              preferred_element_type=jnp.float32)
    m = jnp.max(scores, axis=-1, keepdims=True)
    e = jnp.exp(scores - m)
    aw = e / jnp.sum(e, axis=-1, keepdims=True)
    attn = jnp.dot(aw, v, preferred_element_type=jnp.float32)
    out_ref[...] = jnp.dot(attn, wo_ref[...],
                           preferred_element_type=jnp.float32).astype(out_ref.dtype)
    attw_ref[...] = aw.astype(attw_ref.dtype)


def cross_attention(hs, kv, wq, wk, wv, wo):
    """hs: [N,D], kv: [M,D] -> (attn_output [N,D], attn_weights [N,M])."""
    N, D = hs.shape
    M = kv.shape[0]
    return pl.pallas_call(
        _cross_attn_kernel,
        out_shape=(jax.ShapeDtypeStruct((N, D), jnp.float32),
                   jax.ShapeDtypeStruct((N, M), jnp.float32)),
    )(hs, kv, wq, wk, wv, wo)


# ----------------------------------------------------------------------------
# Model wrapper (eval, phase_one_training=True path). Dropouts are identities.
# ----------------------------------------------------------------------------
class PallasOptimatchModel:
    def __init__(self, key, vocab_size, hidden_dim=128, codebook_hidden=128,
                 num_clusters=16, max_num_statements=8):
        self.hidden_dim = hidden_dim
        self.codebook_hidden = codebook_hidden
        self.num_clusters = num_clusters
        self.max_num_statements = max_num_statements
        ks = iter(jax.random.split(key, 32))

        def w(shape, scale=0.05):
            return (scale * jax.random.normal(next(ks), shape)).astype(jnp.float32)

        H, CH = hidden_dim, codebook_hidden
        # t5.shared word embedding
        self.emb = w((vocab_size, H), 0.5)
        # ClassificationHead parameters (row-layout for the tiny out projections)
        self.params = dict(
            cls_dense_w=w((H, H)), cls_dense_b=w((1, H)),
            cls_out_w_row=w((1, H)), cls_out_b=w((1, 1)),
            pool_wih=w((H, 3 * H)), pool_whh=w((H, 3 * H)),
            pool_bih=w((1, 3 * H)), pool_bhh=w((1, 3 * H)),
            func_dense_w=w((H, H)), func_dense_b=w((1, H)),
            func_out_w_rows=w((2, H)), func_out_b=w((1, 2)),
        )
        # CrossAttention (codebook branch) + codebook
        self.wq = w((CH, CH)); self.wk = w((CH, CH))
        self.wv = w((CH, CH)); self.wo = w((CH, CH))
        self.vp_codebook = w((num_clusters, CH), 0.5)
        # TODO(synk): low/high projections, layer_norm, rnn_patterns_pooling and
        # rnn_statement_embedding belong to the stateful codebook-training branch
        # (geomloss sinkhorn etc.) that is not translated here.

    def forward(self, input_ids_with_pattern, statement_mask):
        """Eval path, phase_one_training=True: returns (probs, func_probs)."""
        inputs_embeds = embed_maxpool(input_ids_with_pattern, self.emb)  # [B,S,H]
        # TODO(synk): the pretrained T5 encoder is an external module passed to
        # __init__ and is not translated; `rep` is passed through unchanged.
        rep = inputs_embeds
        del statement_mask  # consumed only by the (untranslated) T5 encoder
        return classifier_head(rep, self.params)


# ----------------------------------------------------------------------------
# Pure-JAX references for correctness checking.
# ----------------------------------------------------------------------------
def ref_gru_last(x, wih, whh, bih, bhh):
    B, S, H = x.shape

    def step(h, xt):
        gi = xt @ wih + bih
        gh = h @ whh + bhh
        r = jax.nn.sigmoid(gi[:, :H] + gh[:, :H])
        z = jax.nn.sigmoid(gi[:, H:2 * H] + gh[:, H:2 * H])
        n = jnp.tanh(gi[:, 2 * H:] + r * gh[:, 2 * H:])
        return (1.0 - z) * n + z * h, None

    h0 = jnp.zeros((B, H), jnp.float32)
    hT, _ = lax.scan(step, h0, jnp.transpose(x, (1, 0, 2)))
    return hT


def ref_forward(model, ids):
    p = model.params
    emb = model.emb[ids]                       # [B,S,T,H]
    rep = jnp.max(emb, axis=2)                 # amax over tokens
    B, S, H = rep.shape
    x = jnp.tanh(rep.reshape(B * S, H) @ p["cls_dense_w"] + p["cls_dense_b"])
    logits = (x @ p["cls_out_w_row"].T + p["cls_out_b"]).reshape(B, S)
    hT = ref_gru_last(rep, p["pool_wih"], p["pool_whh"], p["pool_bih"], p["pool_bhh"])
    f = jnp.tanh(hT @ p["func_dense_w"] + p["func_dense_b"])
    func_logits = f @ p["func_out_w_rows"].T + p["func_out_b"]
    return jax.nn.sigmoid(logits), jax.nn.softmax(func_logits, axis=-1)


def ref_cross_attention(hs, kv, wq, wk, wv, wo):
    q, k, v = hs @ wq, kv @ wk, kv @ wv
    aw = jax.nn.softmax(-(q @ k.T), axis=-1)
    return (aw @ v) @ wo, aw


if __name__ == "__main__":
    key = jax.random.PRNGKey(0)
    B, S, T = 2, 8, 6          # batch, max_num_statements, tokens per statement
    V, H, CH, NC = 50, 128, 128, 16

    model = PallasOptimatchModel(key, vocab_size=V, hidden_dim=H,
                                 codebook_hidden=CH, num_clusters=NC,
                                 max_num_statements=S)

    kid = jax.random.fold_in(key, 123)
    input_ids = jax.random.randint(kid, (B, S, T), 0, V, dtype=jnp.int32)
    statement_mask = jnp.ones((B, S), dtype=jnp.int32)

    probs, func_probs = model.forward(input_ids, statement_mask)
    jax.block_until_ready((probs, func_probs))

    # correctness vs pure-JAX reference
    r_probs, r_func_probs = ref_forward(model, input_ids)
    np.testing.assert_allclose(np.asarray(probs), np.asarray(r_probs),
                               rtol=1e-5, atol=1e-5)
    np.testing.assert_allclose(np.asarray(func_probs), np.asarray(r_func_probs),
                               rtol=1e-5, atol=1e-5)

    # exercise the CrossAttention kernel (codebook branch dependent class)
    pat = jax.random.normal(jax.random.fold_in(key, 7), (B, CH), jnp.float32)
    a_out, a_w = cross_attention(pat, model.vp_codebook,
                                 model.wq, model.wk, model.wv, model.wo)
    jax.block_until_ready((a_out, a_w))
    r_out, r_w = ref_cross_attention(pat, model.vp_codebook,
                                     model.wq, model.wk, model.wv, model.wo)
    np.testing.assert_allclose(np.asarray(a_out), np.asarray(r_out),
                               rtol=1e-5, atol=1e-5)
    np.testing.assert_allclose(np.asarray(a_w), np.asarray(r_w),
                               rtol=1e-5, atol=1e-5)

    print("KERNEL_OK")
</pallas_src>

<mosaic_0001>
module attributes {stable_mosaic.version = 11 : i64} {
  func.func @_embed_maxpool_kernel(%arg0: i32, %arg1: memref<96xi32, #tpu.memory_space<smem>>, %arg2: memref<50x128xf32, #tpu.memory_space<vmem>>, %arg3: memref<8x128xf32, #tpu.memory_space<vmem>>) attributes {dimension_semantics = [#tpu.dimension_semantics<parallel>], iteration_bounds = array<i64: 2>, scalar_prefetch = 1 : i64, scratch_operands = 0 : i64, tpu.core_type = #tpu.core_type<tc>, window_params = [{pipeline_mode = #tpu.pipeline_mode<synchronous>, transform_indices = @transform_0, window_bounds = array<i64: 50, 128>}, {transform_indices = @transform_1, window_bounds = array<i64: 8, 128>}]} {
    %c8_i32 = arith.constant 8 : i32
    %0 = arith.muli %arg0, %c8_i32 : i32
    %c6_i32 = arith.constant 6 : i32
    %1 = arith.muli %0, %c6_i32 : i32
    %c0_i32 = arith.constant 0 : i32
    %2 = arith.addi %1, %c0_i32 : i32
    %3 = arith.index_cast %2 : i32 to index
    %4 = memref.load %arg1[%3] : memref<96xi32, #tpu.memory_space<smem>>
    %5 = arith.index_cast %4 : i32 to index
    %c0 = arith.constant 0 : index
    %6 = vector.load %arg2[%5, %c0] : memref<50x128xf32, #tpu.memory_space<vmem>>, vector<1x128xf32>
    %c0_i32_0 = arith.constant 0 : i32
    %7 = arith.addi %1, %c0_i32_0 : i32
    %c1_i32 = arith.constant 1 : i32
    %8 = arith.addi %7, %c1_i32 : i32
    %9 = arith.index_cast %8 : i32 to index
    %10 = memref.load %arg1[%9] : memref<96xi32, #tpu.memory_space<smem>>
    %11 = arith.index_cast %10 : i32 to index
    %c0_1 = arith.constant 0 : index
    %12 = vector.load %arg2[%11, %c0_1] : memref<50x128xf32, #tpu.memory_space<vmem>>, vector<1x128xf32>
    %13 = arith.maximumf %6, %12 : vector<1x128xf32>
    %c0_i32_2 = arith.constant 0 : i32
    %14 = arith.addi %1, %c0_i32_2 : i32
    %c2_i32 = arith.constant 2 : i32
    %15 = arith.addi %14, %c2_i32 : i32
    %16 = arith.index_cast %15 : i32 to index
    %17 = memref.load %arg1[%16] : memref<96xi32, #tpu.memory_space<smem>>
    %18 = arith.index_cast %17 : i32 to index
    %c0_3 = arith.constant 0 : index
    %19 = vector.load %arg2[%18, %c0_3] : memref<50x128xf32, #tpu.memory_space<vmem>>, vector<1x128xf32>
    %20 = arith.maximumf %13, %19 : vector<1x128xf32>
    %c0_i32_4 = arith.constant 0 : i32
    %21 = arith.addi %1, %c0_i32_4 : i32
    %c3_i32 = arith.constant 3 : i32
    %22 = arith.addi %21, %c3_i32 : i32
    %23 = arith.index_cast %22 : i32 to index
    %24 = memref.load %arg1[%23] : memref<96xi32, #tpu.memory_space<smem>>
    %25 = arith.index_cast %24 : i32 to index
    %c0_5 = arith.constant 0 : index
    %26 = vector.load %arg2[%25, %c0_5] : memref<50x128xf32, #tpu.memory_space<vmem>>, vector<1x128xf32>
    %27 = arith.maximumf %20, %26 : vector<1x128xf32>
    %c0_i32_6 = arith.constant 0 : i32
    %28 = arith.addi %1, %c0_i32_6 : i32
    %c4_i32 = arith.constant 4 : i32
    %29 = arith.addi %28, %c4_i32 : i32
    %30 = arith.index_cast %29 : i32 to index
    %31 = memref.load %arg1[%30] : memref<96xi32, #tpu.memory_space<smem>>
    %32 = arith.index_cast %31 : i32 to index
    %c0_7 = arith.constant 0 : index
    %33 = vector.load %arg2[%32, %c0_7] : memref<50x128xf32, #tpu.memory_space<vmem>>, vector<1x128xf32>
    %34 = arith.maximumf %27, %33 : vector<1x128xf32>
    %c0_i32_8 = arith.constant 0 : i32
    %35 = arith.addi %1, %c0_i32_8 : i32
    %c5_i32 = arith.constant 5 : i32
    %36 = arith.addi %35, %c5_i32 : i32
    %37 = arith.index_cast %36 : i32 to index
    %38 = memref.load %arg1[%37] : memref<96xi32, #tpu.memory_space<smem>>
    %39 = arith.index_cast %38 : i32 to index
    %c0_9 = arith.constant 0 : index
    %40 = vector.load %arg2[%39, %c0_9] : memref<50x128xf32, #tpu.memory_space<vmem>>, vector<1x128xf32>
    %41 = arith.maximumf %34, %40 : vector<1x128xf32>
    %c6_i32_10 = arith.constant 6 : i32
    %42 = arith.addi %1, %c6_i32_10 : i32
    %43 = arith.index_cast %42 : i32 to index
    %44 = memref.load %arg1[%43] : memref<96xi32, #tpu.memory_space<smem>>
    %45 = arith.index_cast %44 : i32 to index
    %c0_11 = arith.constant 0 : index
    %46 = vector.load %arg2[%45, %c0_11] : memref<50x128xf32, #tpu.memory_space<vmem>>, vector<1x128xf32>
    %c6_i32_12 = arith.constant 6 : i32
    %47 = arith.addi %1, %c6_i32_12 : i32
    %c1_i32_13 = arith.constant 1 : i32
    %48 = arith.addi %47, %c1_i32_13 : i32
    %49 = arith.index_cast %48 : i32 to index
    %50 = memref.load %arg1[%49] : memref<96xi32, #tpu.memory_space<smem>>
    %51 = arith.index_cast %50 : i32 to index
    %c0_14 = arith.constant 0 : index
    %52 = vector.load %arg2[%51, %c0_14] : memref<50x128xf32, #tpu.memory_space<vmem>>, vector<1x128xf32>
    %53 = arith.maximumf %46, %52 : vector<1x128xf32>
    %c6_i32_15 = arith.constant 6 : i32
    %54 = arith.addi %1, %c6_i32_15 : i32
    %c2_i32_16 = arith.constant 2 : i32
    %55 = arith.addi %54, %c2_i32_16 : i32
    %56 = arith.index_cast %55 : i32 to index
    %57 = memref.load %arg1[%56] : memref<96xi32, #tpu.memory_space<smem>>
    %58 = arith.index_cast %57 : i32 to index
    %c0_17 = arith.constant 0 : index
    %59 = vector.load %arg2[%58, %c0_17] : memref<50x128xf32, #tpu.memory_space<vmem>>, vector<1x128xf32>
    %60 = arith.maximumf %53, %59 : vector<1x128xf32>
    %c6_i32_18 = arith.constant 6 : i32
    %61 = arith.addi %1, %c6_i32_18 : i32
    %c3_i32_19 = arith.constant 3 : i32
    %62 = arith.addi %61, %c3_i32_19 : i32
    %63 = arith.index_cast %62 : i32 to index
    %64 = memref.load %arg1[%63] : memref<96xi32, #tpu.memory_space<smem>>
    %65 = arith.index_cast %64 : i32 to index
    %c0_20 = arith.constant 0 : index
    %66 = vector.load %arg2[%65, %c0_20] : memref<50x128xf32, #tpu.memory_space<vmem>>, vector<1x128xf32>
    %67 = arith.maximumf %60, %66 : vector<1x128xf32>
    %c6_i32_21 = arith.constant 6 : i32
    %68 = arith.addi %1, %c6_i32_21 : i32
    %c4_i32_22 = arith.constant 4 : i32
    %69 = arith.addi %68, %c4_i32_22 : i32
    %70 = arith.index_cast %69 : i32 to index
    %71 = memref.load %arg1[%70] : memref<96xi32, #tpu.memory_space<smem>>
    %72 = arith.index_cast %71 : i32 to index
    %c0_23 = arith.constant 0 : index
    %73 = vector.load %arg2[%72, %c0_23] : memref<50x128xf32, #tpu.memory_space<vmem>>, vector<1x128xf32>
    %74 = arith.maximumf %67, %73 : vector<1x128xf32>
    %c6_i32_24 = arith.constant 6 : i32
    %75 = arith.addi %1, %c6_i32_24 : i32
    %c5_i32_25 = arith.constant 5 : i32
    %76 = arith.addi %75, %c5_i32_25 : i32
    %77 = arith.index_cast %76 : i32 to index
    %78 = memref.load %arg1[%77] : memref<96xi32, #tpu.memory_space<smem>>
    %79 = arith.index_cast %78 : i32 to index
    %c0_26 = arith.constant 0 : index
    %80 = vector.load %arg2[%79, %c0_26] : memref<50x128xf32, #tpu.memory_space<vmem>>, vector<1x128xf32>
    %81 = arith.maximumf %74, %80 : vector<1x128xf32>
    %c12_i32 = arith.constant 12 : i32
    %82 = arith.addi %1, %c12_i32 : i32
    %83 = arith.index_cast %82 : i32 to index
    %84 = memref.load %arg1[%83] : memref<96xi32, #tpu.memory_space<smem>>
    %85 = arith.index_cast %84 : i32 to index
    %c0_27 = arith.constant 0 : index
    %86 = vector.load %arg2[%85, %c0_27] : memref<50x128xf32, #tpu.memory_space<vmem>>, vector<1x128xf32>
    %c12_i32_28 = arith.constant 12 : i32
    %87 = arith.addi %1, %c12_i32_28 : i32
    %c1_i32_29 = arith.constant 1 : i32
    %88 = arith.addi %87, %c1_i32_29 : i32
    %89 = arith.index_cast %88 : i32 to index
    %90 = memref.load %arg1[%89] : memref<96xi32, #tpu.memory_space<smem>>
    %91 = arith.index_cast %90 : i32 to index
    %c0_30 = arith.constant 0 : index
    %92 = vector.load %arg2[%91, %c0_30] : memref<50x128xf32, #tpu.memory_space<vmem>>, vector<1x128xf32>
    %93 = arith.maximumf %86, %92 : vector<1x128xf32>
    %c12_i32_31 = arith.constant 12 : i32
    %94 = arith.addi %1, %c12_i32_31 : i32
    %c2_i32_32 = arith.constant 2 : i32
    %95 = arith.addi %94, %c2_i32_32 : i32
    %96 = arith.index_cast %95 : i32 to index
    %97 = memref.load %arg1[%96] : memref<96xi32, #tpu.memory_space<smem>>
    %98 = arith.index_cast %97 : i32 to index
    %c0_33 = arith.constant 0 : index
    %99 = vector.load %arg2[%98, %c0_33] : memref<50x128xf32, #tpu.memory_space<vmem>>, vector<1x128xf32>
    %100 = arith.maximumf %93, %99 : vector<1x128xf32>
    %c12_i32_34 = arith.constant 12 : i32
    %101 = arith.addi %1, %c12_i32_34 : i32
    %c3_i32_35 = arith.constant 3 : i32
    %102 = arith.addi %101, %c3_i32_35 : i32
    %103 = arith.index_cast %102 : i32 to index
    %104 = memref.load %arg1[%103] : memref<96xi32, #tpu.memory_space<smem>>
    %105 = arith.index_cast %104 : i32 to index
    %c0_36 = arith.constant 0 : index
    %106 = vector.load %arg2[%105, %c0_36] : memref<50x128xf32, #tpu.memory_space<vmem>>, vector<1x128xf32>
    %107 = arith.maximumf %100, %106 : vector<1x128xf32>
    %c12_i32_37 = arith.constant 12 : i32
    %108 = arith.addi %1, %c12_i32_37 : i32
    %c4_i32_38 = arith.constant 4 : i32
    %109 = arith.addi %108, %c4_i32_38 : i32
    %110 = arith.index_cast %109 : i32 to index
    %111 = memref.load %arg1[%110] : memref<96xi32, #tpu.memory_space<smem>>
    %112 = arith.index_cast %111 : i32 to index
    %c0_39 = arith.constant 0 : index
    %113 = vector.load %arg2[%112, %c0_39] : memref<50x128xf32, #tpu.memory_space<vmem>>, vector<1x128xf32>
    %114 = arith.maximumf %107, %113 : vector<1x128xf32>
    %c12_i32_40 = arith.constant 12 : i32
    %115 = arith.addi %1, %c12_i32_40 : i32
    %c5_i32_41 = arith.constant 5 : i32
    %116 = arith.addi %115, %c5_i32_41 : i32
    %117 = arith.index_cast %116 : i32 to index
    %118 = memref.load %arg1[%117] : memref<96xi32, #tpu.memory_space<smem>>
    %119 = arith.index_cast %118 : i32 to index
    %c0_42 = arith.constant 0 : index
    %120 = vector.load %arg2[%119, %c0_42] : memref<50x128xf32, #tpu.memory_space<vmem>>, vector<1x128xf32>
    %121 = arith.maximumf %114, %120 : vector<1x128xf32>
    %c18_i32 = arith.constant 18 : i32
    %122 = arith.addi %1, %c18_i32 : i32
    %123 = arith.index_cast %122 : i32 to index
    %124 = memref.load %arg1[%123] : memref<96xi32, #tpu.memory_space<smem>>
    %125 = arith.index_cast %124 : i32 to index
    %c0_43 = arith.constant 0 : index
    %126 = vector.load %arg2[%125, %c0_43] : memref<50x128xf32, #tpu.memory_space<vmem>>, vector<1x128xf32>
    %c18_i32_44 = arith.constant 18 : i32
    %127 = arith.addi %1, %c18_i32_44 : i32
    %c1_i32_45 = arith.constant 1 : i32
    %128 = arith.addi %127, %c1_i32_45 : i32
    %129 = arith.index_cast %128 : i32 to index
    %130 = memref.load %arg1[%129] : memref<96xi32, #tpu.memory_space<smem>>
    %131 = arith.index_cast %130 : i32 to index
    %c0_46 = arith.constant 0 : index
    %132 = vector.load %arg2[%131, %c0_46] : memref<50x128xf32, #tpu.memory_space<vmem>>, vector<1x128xf32>
    %133 = arith.maximumf %126, %132 : vector<1x128xf32>
    %c18_i32_47 = arith.constant 18 : i32
    %134 = arith.addi %1, %c18_i32_47 : i32
    %c2_i32_48 = arith.constant 2 : i32
    %135 = arith.addi %134, %c2_i32_48 : i32
    %136 = arith.index_cast %135 : i32 to index
    %137 = memref.load %arg1[%136] : memref<96xi32, #tpu.memory_space<smem>>
    %138 = arith.index_cast %137 : i32 to index
    %c0_49 = arith.constant 0 : index
    %139 = vector.load %arg2[%138, %c0_49] : memref<50x128xf32, #tpu.memory_space<vmem>>, vector<1x128xf32>
    %140 = arith.maximumf %133, %139 : vector<1x128xf32>
    %c18_i32_50 = arith.constant 18 : i32
    %141 = arith.addi %1, %c18_i32_50 : i32
    %c3_i32_51 = arith.constant 3 : i32
    %142 = arith.addi %141, %c3_i32_51 : i32
    %143 = arith.index_cast %142 : i32 to index
    %144 = memref.load %arg1[%143] : memref<96xi32, #tpu.memory_space<smem>>
    %145 = arith.index_cast %144 : i32 to index
    %c0_52 = arith.constant 0 : index
    %146 = vector.load %arg2[%145, %c0_52] : memref<50x128xf32, #tpu.memory_space<vmem>>, vector<1x128xf32>
    %147 = arith.maximumf %140, %146 : vector<1x128xf32>
    %c18_i32_53 = arith.constant 18 : i32
    %148 = arith.addi %1, %c18_i32_53 : i32
    %c4_i32_54 = arith.constant 4 : i32
    %149 = arith.addi %148, %c4_i32_54 : i32
    %150 = arith.index_cast %149 : i32 to index
    %151 = memref.load %arg1[%150] : memref<96xi32, #tpu.memory_space<smem>>
    %152 = arith.index_cast %151 : i32 to index
    %c0_55 = arith.constant 0 : index
    %153 = vector.load %arg2[%152, %c0_55] : memref<50x128xf32, #tpu.memory_space<vmem>>, vector<1x128xf32>
    %154 = arith.maximumf %147, %153 : vector<1x128xf32>
    %c18_i32_56 = arith.constant 18 : i32
    %155 = arith.addi %1, %c18_i32_56 : i32
    %c5_i32_57 = arith.constant 5 : i32
    %156 = arith.addi %155, %c5_i32_57 : i32
    %157 = arith.index_cast %156 : i32 to index
    %158 = memref.load %arg1[%157] : memref<96xi32, #tpu.memory_space<smem>>
    %159 = arith.index_cast %158 : i32 to index
    %c0_58 = arith.constant 0 : index
    %160 = vector.load %arg2[%159, %c0_58] : memref<50x128xf32, #tpu.memory_space<vmem>>, vector<1x128xf32>
    %161 = arith.maximumf %154, %160 : vector<1x128xf32>
    %c24_i32 = arith.constant 24 : i32
    %162 = arith.addi %1, %c24_i32 : i32
    %163 = arith.index_cast %162 : i32 to index
    %164 = memref.load %arg1[%163] : memref<96xi32, #tpu.memory_space<smem>>
    %165 = arith.index_cast %164 : i32 to index
    %c0_59 = arith.constant 0 : index
    %166 = vector.load %arg2[%165, %c0_59] : memref<50x128xf32, #tpu.memory_space<vmem>>, vector<1x128xf32>
    %c24_i32_60 = arith.constant 24 : i32
    %167 = arith.addi %1, %c24_i32_60 : i32
    %c1_i32_61 = arith.constant 1 : i32
    %168 = arith.addi %167, %c1_i32_61 : i32
    %169 = arith.index_cast %168 : i32 to index
    %170 = memref.load %arg1[%169] : memref<96xi32, #tpu.memory_space<smem>>
    %171 = arith.index_cast %170 : i32 to index
    %c0_62 = arith.constant 0 : index
    %172 = vector.load %arg2[%171, %c0_62] : memref<50x128xf32, #tpu.memory_space<vmem>>, vector<1x128xf32>
    %173 = arith.maximumf %166, %172 : vector<1x128xf32>
    %c24_i32_63 = arith.constant 24 : i32
    %174 = arith.addi %1, %c24_i32_63 : i32
    %c2_i32_64 = arith.constant 2 : i32
    %175 = arith.addi %174, %c2_i32_64 : i32
    %176 = arith.index_cast %175 : i32 to index
    %177 = memref.load %arg1[%176] : memref<96xi32, #tpu.memory_space<smem>>
    %178 = arith.index_cast %177 : i32 to index
    %c0_65 = arith.constant 0 : index
    %179 = vector.load %arg2[%178, %c0_65] : memref<50x128xf32, #tpu.memory_space<vmem>>, vector<1x128xf32>
    %180 = arith.maximumf %173, %179 : vector<1x128xf32>
    %c24_i32_66 = arith.constant 24 : i32
    %181 = arith.addi %1, %c24_i32_66 : i32
    %c3_i32_67 = arith.constant 3 : i32
    %182 = arith.addi %181, %c3_i32_67 : i32
    %183 = arith.index_cast %182 : i32 to index
    %184 = memref.load %arg1[%183] : memref<96xi32, #tpu.memory_space<smem>>
    %185 = arith.index_cast %184 : i32 to index
    %c0_68 = arith.constant 0 : index
    %186 = vector.load %arg2[%185, %c0_68] : memref<50x128xf32, #tpu.memory_space<vmem>>, vector<1x128xf32>
    %187 = arith.maximumf %180, %186 : vector<1x128xf32>
    %c24_i32_69 = arith.constant 24 : i32
    %188 = arith.addi %1, %c24_i32_69 : i32
    %c4_i32_70 = arith.constant 4 : i32
    %189 = arith.addi %188, %c4_i32_70 : i32
    %190 = arith.index_cast %189 : i32 to index
    %191 = memref.load %arg1[%190] : memref<96xi32, #tpu.memory_space<smem>>
    %192 = arith.index_cast %191 : i32 to index
    %c0_71 = arith.constant 0 : index
    %193 = vector.load %arg2[%192, %c0_71] : memref<50x128xf32, #tpu.memory_space<vmem>>, vector<1x128xf32>
    %194 = arith.maximumf %187, %193 : vector<1x128xf32>
    %c24_i32_72 = arith.constant 24 : i32
    %195 = arith.addi %1, %c24_i32_72 : i32
    %c5_i32_73 = arith.constant 5 : i32
    %196 = arith.addi %195, %c5_i32_73 : i32
    %197 = arith.index_cast %196 : i32 to index
    %198 = memref.load %arg1[%197] : memref<96xi32, #tpu.memory_space<smem>>
    %199 = arith.index_cast %198 : i32 to index
    %c0_74 = arith.constant 0 : index
    %200 = vector.load %arg2[%199, %c0_74] : memref<50x128xf32, #tpu.memory_space<vmem>>, vector<1x128xf32>
    %201 = arith.maximumf %194, %200 : vector<1x128xf32>
    %c30_i32 = arith.constant 30 : i32
    %202 = arith.addi %1, %c30_i32 : i32
    %203 = arith.index_cast %202 : i32 to index
    %204 = memref.load %arg1[%203] : memref<96xi32, #tpu.memory_space<smem>>
    %205 = arith.index_cast %204 : i32 to index
    %c0_75 = arith.constant 0 : index
    %206 = vector.load %arg2[%205, %c0_75] : memref<50x128xf32, #tpu.memory_space<vmem>>, vector<1x128xf32>
    %c30_i32_76 = arith.constant 30 : i32
    %207 = arith.addi %1, %c30_i32_76 : i32
    %c1_i32_77 = arith.constant 1 : i32
    %208 = arith.addi %207, %c1_i32_77 : i32
    %209 = arith.index_cast %208 : i32 to index
    %210 = memref.load %arg1[%209] : memref<96xi32, #tpu.memory_space<smem>>
    %211 = arith.index_cast %210 : i32 to index
    %c0_78 = arith.constant 0 : index
    %212 = vector.load %arg2[%211, %c0_78] : memref<50x128xf32, #tpu.memory_space<vmem>>, vector<1x128xf32>
    %213 = arith.maximumf %206, %212 : vector<1x128xf32>
    %c30_i32_79 = arith.constant 30 : i32
    %214 = arith.addi %1, %c30_i32_79 : i32
    %c2_i32_80 = arith.constant 2 : i32
    %215 = arith.addi %214, %c2_i32_80 : i32
    %216 = arith.index_cast %215 : i32 to index
    %217 = memref.load %arg1[%216] : memref<96xi32, #tpu.memory_space<smem>>
    %218 = arith.index_cast %217 : i32 to index
    %c0_81 = arith.constant 0 : index
    %219 = vector.load %arg2[%218, %c0_81] : memref<50x128xf32, #tpu.memory_space<vmem>>, vector<1x128xf32>
    %220 = arith.maximumf %213, %219 : vector<1x128xf32>
    %c30_i32_82 = arith.constant 30 : i32
    %221 = arith.addi %1, %c30_i32_82 : i32
    %c3_i32_83 = arith.constant 3 : i32
    %222 = arith.addi %221, %c3_i32_83 : i32
    %223 = arith.index_cast %222 : i32 to index
    %224 = memref.load %arg1[%223] : memref<96xi32, #tpu.memory_space<smem>>
    %225 = arith.index_cast %224 : i32 to index
    %c0_84 = arith.constant 0 : index
    %226 = vector.load %arg2[%225, %c0_84] : memref<50x128xf32, #tpu.memory_space<vmem>>, vector<1x128xf32>
    %227 = arith.maximumf %220, %226 : vector<1x128xf32>
    %c30_i32_85 = arith.constant 30 : i32
    %228 = arith.addi %1, %c30_i32_85 : i32
    %c4_i32_86 = arith.constant 4 : i32
    %229 = arith.addi %228, %c4_i32_86 : i32
    %230 = arith.index_cast %229 : i32 to index
    %231 = memref.load %arg1[%230] : memref<96xi32, #tpu.memory_space<smem>>
    %232 = arith.index_cast %231 : i32 to index
    %c0_87 = arith.constant 0 : index
    %233 = vector.load %arg2[%232, %c0_87] : memref<50x128xf32, #tpu.memory_space<vmem>>, vector<1x128xf32>
    %234 = arith.maximumf %227, %233 : vector<1x128xf32>
    %c30_i32_88 = arith.constant 30 : i32
    %235 = arith.addi %1, %c30_i32_88 : i32
    %c5_i32_89 = arith.constant 5 : i32
    %236 = arith.addi %235, %c5_i32_89 : i32
    %237 = arith.index_cast %236 : i32 to index
    %238 = memref.load %arg1[%237] : memref<96xi32, #tpu.memory_space<smem>>
    %239 = arith.index_cast %238 : i32 to index
    %c0_90 = arith.constant 0 : index
    %240 = vector.load %arg2[%239, %c0_90] : memref<50x128xf32, #tpu.memory_space<vmem>>, vector<1x128xf32>
    %241 = arith.maximumf %234, %240 : vector<1x128xf32>
    %c36_i32 = arith.constant 36 : i32
    %242 = arith.addi %1, %c36_i32 : i32
    %243 = arith.index_cast %242 : i32 to index
    %244 = memref.load %arg1[%243] : memref<96xi32, #tpu.memory_space<smem>>
    %245 = arith.index_cast %244 : i32 to index
    %c0_91 = arith.constant 0 : index
    %246 = vector.load %arg2[%245, %c0_91] : memref<50x128xf32, #tpu.memory_space<vmem>>, vector<1x128xf32>
    %c36_i32_92 = arith.constant 36 : i32
    %247 = arith.addi %1, %c36_i32_92 : i32
    %c1_i32_93 = arith.constant 1 : i32
    %248 = arith.addi %247, %c1_i32_93 : i32
    %249 = arith.index_cast %248 : i32 to index
    %250 = memref.load %arg1[%249] : memref<96xi32, #tpu.memory_space<smem>>
    %251 = arith.index_cast %250 : i32 to index
    %c0_94 = arith.constant 0 : index
    %252 = vector.load %arg2[%251, %c0_94] : memref<50x128xf32, #tpu.memory_space<vmem>>, vector<1x128xf32>
    %253 = arith.maximumf %246, %252 : vector<1x128xf32>
    %c36_i32_95 = arith.constant 36 : i32
    %254 = arith.addi %1, %c36_i32_95 : i32
    %c2_i32_96 = arith.constant 2 : i32
    %255 = arith.addi %254, %c2_i32_96 : i32
    %256 = arith.index_cast %255 : i32 to index
    %257 = memref.load %arg1[%256] : memref<96xi32, #tpu.memory_space<smem>>
    %258 = arith.index_cast %257 : i32 to index
    %c0_97 = arith.constant 0 : index
    %259 = vector.load %arg2[%258, %c0_97] : memref<50x128xf32, #tpu.memory_space<vmem>>, vector<1x128xf32>
    %260 = arith.maximumf %253, %259 : vector<1x128xf32>
    %c36_i32_98 = arith.constant 36 : i32
    %261 = arith.addi %1, %c36_i32_98 : i32
    %c3_i32_99 = arith.constant 3 : i32
    %262 = arith.addi %261, %c3_i32_99 : i32
    %263 = arith.index_cast %262 : i32 to index
    %264 = memref.load %arg1[%263] : memref<96xi32, #tpu.memory_space<smem>>
    %265 = arith.index_cast %264 : i32 to index
    %c0_100 = arith.constant 0 : index
    %266 = vector.load %arg2[%265, %c0_100] : memref<50x128xf32, #tpu.memory_space<vmem>>, vector<1x128xf32>
    %267 = arith.maximumf %260, %266 : vector<1x128xf32>
    %c36_i32_101 = arith.constant 36 : i32
    %268 = arith.addi %1, %c36_i32_101 : i32
    %c4_i32_102 = arith.constant 4 : i32
    %269 = arith.addi %268, %c4_i32_102 : i32
    %270 = arith.index_cast %269 : i32 to index
    %271 = memref.load %arg1[%270] : memref<96xi32, #tpu.memory_space<smem>>
    %272 = arith.index_cast %271 : i32 to index
    %c0_103 = arith.constant 0 : index
    %273 = vector.load %arg2[%272, %c0_103] : memref<50x128xf32, #tpu.memory_space<vmem>>, vector<1x128xf32>
    %274 = arith.maximumf %267, %273 : vector<1x128xf32>
    %c36_i32_104 = arith.constant 36 : i32
    %275 = arith.addi %1, %c36_i32_104 : i32
    %c5_i32_105 = arith.constant 5 : i32
    %276 = arith.addi %275, %c5_i32_105 : i32
    %277 = arith.index_cast %276 : i32 to index
    %278 = memref.load %arg1[%277] : memref<96xi32, #tpu.memory_space<smem>>
    %279 = arith.index_cast %278 : i32 to index
    %c0_106 = arith.constant 0 : index
    %280 = vector.load %arg2[%279, %c0_106] : memref<50x128xf32, #tpu.memory_space<vmem>>, vector<1x128xf32>
    %281 = arith.maximumf %274, %280 : vector<1x128xf32>
    %c42_i32 = arith.constant 42 : i32
    %282 = arith.addi %1, %c42_i32 : i32
    %283 = arith.index_cast %282 : i32 to index
    %284 = memref.load %arg1[%283] : memref<96xi32, #tpu.memory_space<smem>>
    %285 = arith.index_cast %284 : i32 to index
    %c0_107 = arith.constant 0 : index
    %286 = vector.load %arg2[%285, %c0_107] : memref<50x128xf32, #tpu.memory_space<vmem>>, vector<1x128xf32>
    %c42_i32_108 = arith.constant 42 : i32
    %287 = arith.addi %1, %c42_i32_108 : i32
    %c1_i32_109 = arith.constant 1 : i32
    %288 = arith.addi %287, %c1_i32_109 : i32
    %289 = arith.index_cast %288 : i32 to index
    %290 = memref.load %arg1[%289] : memref<96xi32, #tpu.memory_space<smem>>
    %291 = arith.index_cast %290 : i32 to index
    %c0_110 = arith.constant 0 : index
    %292 = vector.load %arg2[%291, %c0_110] : memref<50x128xf32, #tpu.memory_space<vmem>>, vector<1x128xf32>
    %293 = arith.maximumf %286, %292 : vector<1x128xf32>
    %c42_i32_111 = arith.constant 42 : i32
    %294 = arith.addi %1, %c42_i32_111 : i32
    %c2_i32_112 = arith.constant 2 : i32
    %295 = arith.addi %294, %c2_i32_112 : i32
    %296 = arith.index_cast %295 : i32 to index
    %297 = memref.load %arg1[%296] : memref<96xi32, #tpu.memory_space<smem>>
    %298 = arith.index_cast %297 : i32 to index
    %c0_113 = arith.constant 0 : index
    %299 = vector.load %arg2[%298, %c0_113] : memref<50x128xf32, #tpu.memory_space<vmem>>, vector<1x128xf32>
    %300 = arith.maximumf %293, %299 : vector<1x128xf32>
    %c42_i32_114 = arith.constant 42 : i32
    %301 = arith.addi %1, %c42_i32_114 : i32
    %c3_i32_115 = arith.constant 3 : i32
    %302 = arith.addi %301, %c3_i32_115 : i32
    %303 = arith.index_cast %302 : i32 to index
    %304 = memref.load %arg1[%303] : memref<96xi32, #tpu.memory_space<smem>>
    %305 = arith.index_cast %304 : i32 to index
    %c0_116 = arith.constant 0 : index
    %306 = vector.load %arg2[%305, %c0_116] : memref<50x128xf32, #tpu.memory_space<vmem>>, vector<1x128xf32>
    %307 = arith.maximumf %300, %306 : vector<1x128xf32>
    %c42_i32_117 = arith.constant 42 : i32
    %308 = arith.addi %1, %c42_i32_117 : i32
    %c4_i32_118 = arith.constant 4 : i32
    %309 = arith.addi %308, %c4_i32_118 : i32
    %310 = arith.index_cast %309 : i32 to index
    %311 = memref.load %arg1[%310] : memref<96xi32, #tpu.memory_space<smem>>
    %312 = arith.index_cast %311 : i32 to index
    %c0_119 = arith.constant 0 : index
    %313 = vector.load %arg2[%312, %c0_119] : memref<50x128xf32, #tpu.memory_space<vmem>>, vector<1x128xf32>
    %314 = arith.maximumf %307, %313 : vector<1x128xf32>
    %c42_i32_120 = arith.constant 42 : i32
    %315 = arith.addi %1, %c42_i32_120 : i32
    %c5_i32_121 = arith.constant 5 : i32
    %316 = arith.addi %315, %c5_i32_121 : i32
    %317 = arith.index_cast %316 : i32 to index
    %318 = memref.load %arg1[%317] : memref<96xi32, #tpu.memory_space<smem>>
    %319 = arith.index_cast %318 : i32 to index
    %c0_122 = arith.constant 0 : index
    %320 = vector.load %arg2[%319, %c0_122] : memref<50x128xf32, #tpu.memory_space<vmem>>, vector<1x128xf32>
    %321 = arith.maximumf %314, %320 : vector<1x128xf32>
    %322 = tpu.concatenate %41, %81, %121, %161, %201, %241, %281, %321 in 0 : vector<1x128xf32>, vector<1x128xf32>, vector<1x128xf32>, vector<1x128xf32>, vector<1x128xf32>, vector<1x128xf32>, vector<1x128xf32>, vector<1x128xf32> -> vector<8x128xf32>
    %c0_123 = arith.constant 0 : index
    %c0_124 = arith.constant 0 : index
    %323 = vector.load %arg3[%c0_123, %c0_124] : memref<8x128xf32, #tpu.memory_space<vmem>>, vector<8x128xf32>
    tpu.vector_store %arg3[%c0_123, %c0_124], %322 {strides = array<i32>} : memref<8x128xf32, #tpu.memory_space<vmem>>, vector<8x128xf32>,
    return
  }
  func.func @transform_0(%arg0: i32, %arg1: memref<96xi32, #tpu.memory_space<smem>>) -> (i32, i32) {
    %c0_i32 = arith.constant 0 : i32
    %c0_i32_0 = arith.constant 0 : i32
    %c0_i32_1 = arith.constant 0 : i32
    return %c0_i32, %c0_i32_0 : i32, i32
  }
  func.func @transform_1(%arg0: i32, %arg1: memref<96xi32, #tpu.memory_space<smem>>) -> (i32, i32) {
    %c0_i32 = arith.constant 0 : i32
    %c0_i32_0 = arith.constant 0 : i32
    return %arg0, %c0_i32 : i32, i32
  }
}

</mosaic_0001>

<bundles_post_ra>
// kernel: tpu_custom_call.1
= control target key start
LH: loop header
LB: loop body
LE: loop exit
PB: predicated region body
PF: predicated region fallthrough
CT: control target
= control target key end

     0   :  { %s687_s12 = smov [#allocation3]   ;;  %s992_s0 = inlined_call_operand.hbm [shape: s32[96], index: 0, kind: input, shape index: {}]   ;;  %s993_s1 = inlined_call_operand.hbm [shape: f32[50,128], index: 1, kind: input, shape index: {}]   ;;  %s994_s2 = inlined_call_operand.hbm [shape: f32[16,128], index: 2, kind: output, shape index: {}]  }
   0x1   :  { %1007 = sst [smem:[#allocation26_spill]] %s993_s1  ;;  %s8_s11 = sshll.u32 %s992_s0, 4  ;;  %s9_s11 = int_to_ptr.hbm [resolvable:$true] %s8_s11 }
   0x2   :  { %1008 = sst [smem:[#allocation27_spill]] %s994_s2 }
   0x3   :  { %11 = dma.hbm_to_smem %s9_s11, 16, %s687_s12, [#allocation2] }
   0x4   :  { %661 = dma.done.wait [#allocation2], 16 }
   0x5   :  { %662 = vsyncadd [#allocation2], 4294967280 }
   0x6   :  { %14 = sfence }
   0x7   :  { %15 = vsyncpa [#allocation5], 0 }
   0x8   :  { %16 = vsyncpa [#allocation6], 0 }
   0x9   :  { %18 = vsyncpa [#allocation6 + $0x1], 0  ;;  %s709_s13 = smov 0   ;;  %s711_s14 = smov 0  }
   0xa   :  { %s713_s15 = smov 0   ;;  %s715_s16 = smov 0  }
   0xb LB: > { %1009 = sst [smem:[#allocation11_spill]] %s673_s13  ;;  %s730_s0 = sadd.s32 4294967295, %s685_s16   ;;  %s685_s16 = sphi %s715_s16, %s1040_s16   ;;  %s681_s15 = sphi %s713_s15, %s1043_s15   ;;  %s677_s14 = sphi %s711_s14, %s1042_s14   ;;  %s673_s13 = sphi %s709_s13, %s1041_s13  }
   0xc   : > { %1010 = sst [smem:[#allocation12_spill]] %s677_s14  ;;  %s512_s17 = sadd.s32 4294967294, %s685_s16  }
   0xd   : > { %1011 = sst [smem:[#allocation13_spill]] %s681_s15  ;;  %s734_s18 = sadd.s32 1, %s685_s16  }
   0xe   : > { %1012 = sst [smem:[#allocation14_spill]] %s685_s16  ;;  %s52_s19 = sadd.s32 1, %s681_s15 }
   0xf   : > { %1013 = sst [smem:[#allocation15_spill]] %s730_s0  ;;  %s49_s20 = ssub.s32 %s685_s16, %s734_s18 }
  0x10   : > { %1014 = sst [smem:[#allocation16_spill]] %s734_s18  ;;  %p62_p0 = scmp.ne.s32.totalorder %s681_s15, %s677_s14 }
  0x11   : > { %p50_p1 = scmp.eq.s32.totalorder %s49_s20, 0  ;;  %p63_p2 = scmp.eq.s32.totalorder %s730_s0, 1 }
  0x12   : > { %p68_p3 = scmp.ne.s32.totalorder %s677_s14, %s673_s13  ;;  %p69_p4 = scmp.eq.s32.totalorder %s512_s17, 1 }
  0x13   : > { %s745_s21 = scalar_select %p50_p1, %s681_s15, %s52_s19  }
  0x14   : > { %p747_p5 = por %p63_p2, %p62_p0  ;;  %p751_p6 = por %p69_p4, %p68_p3 }
  0x15   : > { %1015 = sst [smem:[#allocation17_spill]] %s745_s21  ;;  %p513_p7 = scmp.ge.s32.totalorder %s685_s16, 1 }
  0x16   : > { %s1016_s22 = scalar_select %p747_p5, 1, 0 }
  0x17   : > { %s1018_s23 = scalar_select %p751_p6, 1, 0 }
  0x18   : > { %1017 = sst [smem:[#allocation18_spill]] %s1016_s22  ;;  %p76_p8 = scmp.lt.s32.totalorder %s685_s16, 3 }
  0x19   : > { %1019 = sst [smem:[#allocation19_spill]] %s1018_s23  ;;  %p536_p9 = scmp.eq.s32.totalorder %s730_s0, 0 }
  0x1a   : > { %p77_p10 = pnand %p513_p7, %p76_p8  ;;  %s1020_s1 = sld [smem:[#allocation26_spill]] }
  0x1b   : > { %s688_s27 = smov [#allocation4]   ;;  %s689_s29 = smov 128  }
  0x1c   : > { %p528_p11 = pneg %p77_p10  ;;  %s89_s28 = sshll.u32 %s688_s27, 4  ;;  %s90_s28 = int_to_ptr.vmem [resolvable:$true] %s89_s28 }
  0x1d   : > { %s690_s30 = smov 8   ;;  %105 = sbr.rel (%p77_p10) target bundleno = 134 (0x86), region = 24 }
  0x1e   : > { %p529_p12 = pnand %p536_p9, %p528_p11 }
  0x20   : > { %s87_s26 = sshll.u32 %s1020_s1, 4  ;;  %s88_s26 = int_to_ptr.hbm [resolvable:$true] %s87_s26 }
  0x21   : > { %531 = dma.hbm_to_vmem [thread:$0]  (!%p529_p12), %s88_s26, 896, %s90_s28, [#allocation5], %s689_s29, %s689_s29, %s690_s30  }
  0x22   : > { %664 = dma.done.wait (%p536_p9), [#allocation5], 896  }
  0x23   : > { %666 = vsyncadd (%p536_p9), [#allocation5], 4294966400  ;;  %s768_s3 = smul.u32 48, %s730_s0  ;;  %vm374_vm0 = vcmask 1040384   ;;  %vm376_vm1 = vcmask 1041408   ;;  %vm378_vm2 = vcmask 1042432  }
  0x24   : > { %vm380_vm3 = vcmask 1043456   ;;  %vm382_vm4 = vcmask 1044480   ;;  %vm384_vm5 = vcmask 1045504   ;;  %vm386_vm6 = vcmask 1046528  }
  0x25   : > { %s771_s4 = sld [smem:[#allocation3 + %s768_s3]]  ;;  %s125_s5 = sadd.s32 1, %s768_s3 }
  0x26   : > { %s130_s6 = sadd.s32 2, %s768_s3  ;;  %s775_s7 = sld [smem:[#allocation3 + %s125_s5]] }
  0x27   : > { %s135_s8 = sadd.s32 3, %s768_s3  ;;  %s778_s9 = sld [smem:[#allocation3 + %s130_s6]] }
  0x28   : > { %s140_s10 = sadd.s32 4, %s768_s3  ;;  %s781_s11 = sld [smem:[#allocation3 + %s135_s8]] }
  0x29   : > { %s145_s12 = sadd.s32 5, %s768_s3  ;;  %s784_s17 = sld [smem:[#allocation3 + %s140_s10]] }
  0x2a   : > { %s150_s19 = sadd.s32 6, %s768_s3  ;;  %s787_s20 = sld [smem:[#allocation3 + %s145_s12]] }
  0x2b   : > { %s789_s24 = sld [smem:[#allocation3 + %s150_s19]]  ;;  %s154_s25 = sadd.s32 7, %s768_s3 }
  0x2c   : > { %s792_s26 = sld [smem:[#allocation3 + %s154_s25]]  ;;  %s159_s27 = sadd.s32 8, %s768_s3 }
  0x2d   : > { %s795_s28 = sld [smem:[#allocation3 + %s159_s27]]  ;;  %s164_s29 = sadd.s32 9, %s768_s3 }
  0x2e   : > { %s798_s30 = sld [smem:[#allocation3 + %s164_s29]]  ;;  %s169_s5 = sadd.s32 10, %s768_s3 }
  0x2f   : > { %s801_s6 = sld [smem:[#allocation3 + %s169_s5]]  ;;  %s174_s8 = sadd.s32 11, %s768_s3 }
  0x30   : > { %1021 = sst [smem:[#allocation20_spill]] %s787_s20  ;;  %s179_s10 = sadd.s32 12, %s768_s3 }
  0x31   : > { %s805_s12 = sld [smem:[#allocation3 + %s174_s8]]  ;;  %s183_s25 = sadd.s32 13, %s768_s3 }
  0x32   : > { %s807_s19 = sld [smem:[#allocation3 + %s179_s10]]  ;;  %s188_s1 = sadd.s32 14, %s768_s3 }
  0x33   : > { %s810_s27 = sld [smem:[#allocation3 + %s183_s25]]  ;;  %s193_s29 = sadd.s32 15, %s768_s3 }
  0x34   : > { %s814_s21 = sld [smem:[#allocation3 + %s188_s1]]  ;;  %s198_s15 = sadd.s32 16, %s768_s3 }
  0x35   : > { %s816_s5 = sld [smem:[#allocation3 + %s193_s29]]  ;;  %s203_s8 = sadd.s32 17, %s768_s3 }
  0x36   : > { %s819_s18 = sld [smem:[#allocation3 + %s198_s15]]  ;;  %s208_s23 = sadd.s32 18, %s768_s3 }
  0x37   : > { %1022 = sst [smem:[#allocation21_spill]] %s805_s12  ;;  %s212_s25 = sadd.s32 19, %s768_s3 }
  0x38   : > { %s822_s10 = sld [smem:[#allocation3 + %s203_s8]]  ;;  %s217_s1 = sadd.s32 20, %s768_s3 }
  0x39   : > { %s826_s13 = sld [smem:[#allocation3 + %s208_s23]]  ;;  %s222_s22 = sadd.s32 21, %s768_s3 }
  0x3a   : > { %s828_s16 = sld [smem:[#allocation3 + %s212_s25]]  ;;  %s227_s2 = sadd.s32 22, %s768_s3 }
  0x3b   : > { %s831_s29 = sld [smem:[#allocation3 + %s217_s1]]  ;;  %s232_s8 = sadd.s32 23, %s768_s3 }
  0x3c   : > { %1023 = sst [smem:[#allocation22_spill]] %s819_s18  ;;  %s237_s23 = sadd.s32 24, %s768_s3 }
  0x3d   : > { %s834_s15 = sld [smem:[#allocation3 + %s222_s22]]  ;;  %s241_s20 = sadd.s32 25, %s768_s3 }
  0x3e   : > { %1024 = sst [smem:[#allocation23_spill]] %s822_s10  ;;  %s246_s1 = sadd.s32 26, %s768_s3 }
  0x3f   : > { %s838_s0 = sld [smem:[#allocation3 + %s227_s2]]  ;;  %s251_s22 = sadd.s32 27, %s768_s3 }
  0x40   : > { %s840_s14 = sld [smem:[#allocation3 + %s232_s8]]  ;;  %s152_s12 = scalar_lea.vmem [#allocation4], %s789_s24 }
  0x41   : > { %s844_s25 = sld [smem:[#allocation3 + %s237_s23]]  ;;  %v153_v0 = vld [vmem:[%s152_s12] sm:$0x1]  ;;  %s156_s18 = scalar_lea.vmem [#allocation4], %s792_s26 }
  0x42   : > { %s846_s10 = sld [smem:[#allocation3 + %s241_s20]]  ;;  %v157_v1 = vld [vmem:[%s156_s18] sm:$0x1]  ;;  %s256_s23 = sadd.s32 28, %s768_s3 }
  0x43   : > { %s852_s2 = sld [smem:[#allocation3 + %s246_s1]]  ;;  %s261_s20 = sadd.s32 29, %s768_s3  ;;  %v158_v3 = vmax.f32 %v153_v0, %v157_v1 }
  0x44   : > { %s854_s8 = sld [smem:[#allocation3 + %s251_s22]]  ;;  %s185_s24 = scalar_lea.vmem [#allocation4], %s810_s27 }
  0x45   : > { %1025 = sst [smem:[#allocation24_spill]] %s838_s0  ;;  %s181_s0 = scalar_lea.vmem [#allocation4], %s807_s19  ;;  %v186_v5 = vld [vmem:[%s185_s24] sm:$0x1] }
  0x46   : > { %1026 = sst [smem:[#allocation25_spill]] %s840_s14  ;;  %s123_s14 = scalar_lea.vmem [#allocation4], %s771_s4  ;;  %v182_v4 = vld [vmem:[%s181_s0] sm:$0x1] }
  0x47   : > { %v124_v2 = vld [vmem:[%s123_s14] sm:$0x1]  ;;  %s861_s26 = sld [smem:[#allocation3 + %s256_s23]]  ;;  %s127_s18 = scalar_lea.vmem [#allocation4], %s775_s7  ;;  %v187_v8 = vmax.f32 %v182_v4, %v186_v5 }
  0x48   : > { %v128_v6 = vld [vmem:[%s127_s18] sm:$0x1]  ;;  %s161_s12 = scalar_lea.vmem [#allocation4], %s795_s28  ;;  %s865_s4 = sld [smem:[#allocation3 + %s261_s20]] }
  0x49   : > { %v162_v7 = vld [vmem:[%s161_s12] sm:$0x1]  ;;  %s266_s14 = sadd.s32 30, %s768_s3  ;;  %s270_s1 = sadd.s32 31, %s768_s3  ;;  %v129_v11 = vmax.f32 %v124_v2, %v128_v6 }
  0x4a   : > { %s210_s19 = scalar_lea.vmem [#allocation4], %s826_s13  ;;  %s214_s0 = scalar_lea.vmem [#allocation4], %s828_s16  ;;  %v163_v12 = vmax.f32 %v158_v3, %v162_v7 }
  0x4b   : > { %v211_v9 = vld [vmem:[%s210_s19] sm:$0x1]  ;;  %s871_s27 = sld [smem:[#allocation3 + %s266_s14]]  ;;  %s190_s7 = scalar_lea.vmem [#allocation4], %s814_s21 }
  0x4c   : > { %v215_v10 = vld [vmem:[%s214_s0] sm:$0x1]  ;;  %s874_s28 = sld [smem:[#allocation3 + %s270_s1]]  ;;  %s132_s22 = scalar_lea.vmem [#allocation4], %s778_s9 }
  0x4d   : > { %v191_v13 = vld [vmem:[%s190_s7] sm:$0x1]  ;;  %s166_s23 = scalar_lea.vmem [#allocation4], %s798_s30  ;;  %s275_s13 = sadd.s32 32, %s768_s3  ;;  %v216_v16 = vmax.f32 %v211_v9, %v215_v10 }
  0x4e   : > { %v133_v14 = vld [vmem:[%s132_s22] sm:$0x1]  ;;  %s280_s20 = sadd.s32 33, %s768_s3  ;;  %s239_s16 = scalar_lea.vmem [#allocation4], %s844_s25  ;;  %v192_v19 = vmax.f32 %v187_v8, %v191_v13 }
  0x4f   : > { %v167_v15 = vld [vmem:[%s166_s23] sm:$0x1]  ;;  %s243_s24 = scalar_lea.vmem [#allocation4], %s846_s10  ;;  %s882_s21 = sld [smem:[#allocation3 + %s275_s13]]  ;;  %v134_v21 = vmax.f32 %v129_v11, %v133_v14 }
  0x50   : > { %v240_v17 = vld [vmem:[%s239_s16] sm:$0x1]  ;;  %s219_s18 = scalar_lea.vmem [#allocation4], %s831_s29  ;;  %s885_s9 = sld [smem:[#allocation3 + %s280_s20]]  ;;  %v168_v22 = vmax.f32 %v163_v12, %v167_v15 }
  0x51   : > { %v244_v18 = vld [vmem:[%s243_s24] sm:$0x1]  ;;  %s195_s30 = scalar_lea.vmem [#allocation4], %s816_s5  ;;  %s285_s12 = sadd.s32 34, %s768_s3 }
  0x52   : > { %v220_v20 = vld [vmem:[%s219_s18] sm:$0x1]  ;;  %s290_s25 = sadd.s32 35, %s768_s3  ;;  %s137_s14 = scalar_lea.vmem [#allocation4], %s781_s11  ;;  %v245_v26 = vmax.f32 %v240_v17, %v244_v18 }
  0x53   : > { %v196_v23 = vld [vmem:[%s195_s30] sm:$0x1]  ;;  %s171_s10 = scalar_lea.vmem [#allocation4], %s801_s6  ;;  %s892_s29 = sld [smem:[#allocation3 + %s285_s12]]  ;;  %v221_v27 = vmax.f32 %v216_v16, %v220_v20 }
  0x54   : > { %v138_v24 = vld [vmem:[%s137_s14] sm:$0x1]  ;;  %s248_s1 = scalar_lea.vmem [#allocation4], %s852_s2  ;;  %s1027_s19 = sld [smem:[#allocation22_spill]]  ;;  %v197_v30 = vmax.f32 %v192_v19, %v196_v23 }
  0x55   : > { %v172_v25 = vld [vmem:[%s171_s10] sm:$0x1]  ;;  %s268_s5 = scalar_lea.vmem [#allocation4], %s871_s27  ;;  %s896_s0 = sld [smem:[#allocation3 + %s290_s25]]  ;;  %v139_v33 = vmax.f32 %v134_v21, %v138_v24 }
  0x56   : > { %v249_v28 = vld [vmem:[%s248_s1] sm:$0x1]  ;;  %s1028_s7 = sld [smem:[#allocation21_spill]]  ;;  %s224_s11 = scalar_lea.vmem [#allocation4], %s834_s15  ;;  %v173_v35 = vmax.f32 %v168_v22, %v172_v25 }
  0x57   : > { %v269_v29 = vld [vmem:[%s268_s5] sm:$0x1]  ;;  %s272_s6 = scalar_lea.vmem [#allocation4], %s874_s28  ;;  %s295_s22 = sadd.s32 36, %s768_s3  ;;  %v250_v39 = vmax.f32 %v245_v26, %v249_v28 }
  0x58   : > { %v225_v31 = vld [vmem:[%s224_s11] sm:$0x1]  ;;  %s299_s23 = sadd.s32 37, %s768_s3  ;;  %s142_s13 = scalar_lea.vmem [#allocation4], %s784_s17 }
  0x59   : > { %v273_v32 = vld [vmem:[%s272_s6] sm:$0x1]  ;;  %s1029_s27 = sld [smem:[#allocation24_spill]]  ;;  %s277_s28 = scalar_lea.vmem [#allocation4], %s882_s21  ;;  %v226_v41 = vmax.f32 %v221_v27, %v225_v31 }
  0x5a   : > { %v143_v34 = vld [vmem:[%s142_s13] sm:$0x1]  ;;  %s200_s2 = scalar_lea.vmem [#allocation4], %s1027_s19  ;;  %v274_v37 = vmax.f32 %v269_v29, %v273_v32  ;;  %s904_s20 = sld [smem:[#allocation3 + %s295_s22]] }
  0x5b   : > { %v201_v36 = vld [vmem:[%s200_s2] sm:$0x1]  ;;  %s1030_s16 = sld [smem:[#allocation23_spill]]  ;;  %s253_s17 = scalar_lea.vmem [#allocation4], %s854_s8  ;;  %v144_v45 = vmax.f32 %v139_v33, %v143_v34 }
  0x5c   : > { %s176_s15 = scalar_lea.vmem [#allocation4], %s1028_s7  ;;  %v278_v40 = vld [vmem:[%s277_s28] sm:$0x1]  ;;  %s908_s24 = sld [smem:[#allocation3 + %s299_s23]]  ;;  %v202_v43 = vmax.f32 %v197_v30, %v201_v36 }
  0x5d   : > { %v177_v38 = vld [vmem:[%s176_s15] sm:$0x1]  ;;  %s1031_s18 = sld [smem:[#allocation20_spill]]  ;;  %s304_s30 = sadd.s32 38, %s768_s3  ;;  %v279_v48 = vmax.f32 %v274_v37, %v278_v40 }
  0x5e   : > { %v254_v42 = vld [vmem:[%s253_s17] sm:$0x1]  ;;  %s309_s12 = sadd.s32 39, %s768_s3  ;;  %s914_s14 = sld [smem:[#allocation3 + %s304_s30]]  ;;  %v178_v46 = vmax.f32 %v173_v35, %v177_v38 }
  0x5f   : > { %s229_s25 = scalar_lea.vmem [#allocation4], %s1029_s27  ;;  %s1032_s10 = sld [smem:[#allocation25_spill]]  ;;  %v255_v50 = vmax.f32 %v250_v39, %v254_v42 }
  0x60   : > { %v230_v44 = vld [vmem:[%s229_s25] sm:$0x1]  ;;  %s917_s8 = sld [smem:[#allocation3 + %s309_s12]]  ;;  %s282_s19 = scalar_lea.vmem [#allocation4], %s885_s9  ;;  %v354_v60 = vrot.slane %v178_v46, 7 }
  0x61   : > { %s205_s21 = scalar_lea.vmem [#allocation4], %s1030_s16  ;;  %v283_v51 = vld [vmem:[%s282_s19] sm:$0x1]  ;;  %s314_s5 = sadd.s32 40, %s768_s3  ;;  %v231_v52 = vmax.f32 %v226_v41, %v230_v44 }
  0x62   : > { %v206_v47 = vld [vmem:[%s205_s21] sm:$0x1]  ;;  %s319_s7 = sadd.s32 41, %s768_s3  ;;  %s258_s11 = scalar_lea.vmem [#allocation4], %s861_s26  ;;  %v284_v58 = vmax.f32 %v279_v48, %v283_v51 }
  0x63   : > { %s147_s1 = scalar_lea.vmem [#allocation4], %s1031_s18  ;;  %v259_v53 = vld [vmem:[%s258_s11] sm:$0x1]  ;;  %s924_s6 = sld [smem:[#allocation3 + %s314_s5]]  ;;  %v207_v54 = vmax.f32 %v202_v43, %v206_v47 }
  0x64   : > { %v148_v49 = vld [vmem:[%s147_s1] sm:$0x1]  ;;  %s297_s23 = scalar_lea.vmem [#allocation4], %s904_s20  ;;  %s928_s13 = sld [smem:[#allocation3 + %s319_s7]]  ;;  %v260_v61 = vmax.f32 %v255_v50, %v259_v53 }
  0x65   : > { %s234_s22 = scalar_lea.vmem [#allocation4], %s1032_s10  ;;  %v298_v56 = vld [vmem:[%s297_s23] sm:$0x1]  ;;  %v149_v57 = vmax.f32 %v144_v45, %v148_v49  ;;  %s301_s9 = scalar_lea.vmem [#allocation4], %s908_s24  ;;  %v357_v5 = vrot.slane %v207_v54, 6 }
  0x66   : > { %v235_v55 = vld [vmem:[%s234_s22] sm:$0x1]  ;;  %s324_s2 = sadd.s32 42, %s768_s3  ;;  %s328_s26 = sadd.s32 43, %s768_s3 }
  0x67   : > { %v302_v59 = vld [vmem:[%s301_s9] sm:$0x1]  ;;  %s287_s27 = scalar_lea.vmem [#allocation4], %s892_s29  ;;  %s934_s20 = sld [smem:[#allocation3 + %s324_s2]]  ;;  %v236_v0 = vmax.f32 %v231_v52, %v235_v55  ;;  %v375_v7 = vsel %vm374_vm0, %v149_v57, %v354_v60 }
  0x68   : > { %v288_v62 = vld [vmem:[%s287_s27] sm:$0x1]  ;;  %v303_v63 = vmax.f32 %v298_v56, %v302_v59  ;;  %s263_s15 = scalar_lea.vmem [#allocation4], %s865_s4  ;;  %s306_s16 = scalar_lea.vmem [#allocation4], %s914_s14  ;;  %v377_v14 = vsel %vm376_vm1, %v375_v7, %v357_v5 }
  0x69   : > { %v264_v1 = vld [vmem:[%s263_s15] sm:$0x1]  ;;  %s938_s28 = sld [smem:[#allocation3 + %s328_s26]]  ;;  %s311_s24 = scalar_lea.vmem [#allocation4], %s917_s8  ;;  %v289_v6 = vmax.f32 %v284_v58, %v288_v62  ;;  %v360_v12 = vrot.slane %v236_v0, 5 }
  0x6a   : > { %v307_v2 = vld [vmem:[%s306_s16] sm:$0x1]  ;;  %s333_s29 = sadd.s32 44, %s768_s3  ;;  %s338_s18 = sadd.s32 45, %s768_s3  ;;  %v265_v8 = vmax.f32 %v260_v61, %v264_v1 }
  0x6b   : > { %v308_v3 = vmax.f32 %v303_v63, %v307_v2  ;;  %v312_v4 = vld [vmem:[%s311_s24] sm:$0x1]  ;;  %s943_s17 = sld [smem:[#allocation3 + %s333_s29]]  ;;  %s292_s4 = scalar_lea.vmem [#allocation4], %s896_s0  ;;  %v379_v21 = vsel %vm378_vm2, %v377_v14, %v360_v12 }
  0x6c   : > { %v293_v9 = vld [vmem:[%s292_s4] sm:$0x1]  ;;  %s316_s30 = scalar_lea.vmem [#allocation4], %s924_s6  ;;  %s1033_s12 = sld [smem:[#allocation12_spill]]  ;;  %v363_v19 = vrot.slane %v265_v8, 4 }
  0x6d   : > { %v313_v10 = vmax.f32 %v308_v3, %v312_v4  ;;  %v317_v11 = vld [vmem:[%s316_s30] sm:$0x1]  ;;  %s339_s25 = sld [smem:[#allocation3 + %s338_s18]]  ;;  %s343_s14 = sadd.s32 46, %s768_s3  ;;  %v294_v15 = vmax.f32 %v289_v6, %v293_v9 }
  0x6e   : > { %s348_s21 = sadd.s32 47, %s768_s3  ;;  %s949_s10 = sld [smem:[#allocation3 + %s343_s14]]  ;;  %v381_v27 = vsel %vm380_vm3, %v379_v21, %v363_v19 }
  0x6f   : > { %v318_v13 = vmax.f32 %v313_v10, %v317_v11  ;;  %s321_s0 = scalar_lea.vmem [#allocation4], %s928_s13  ;;  %s326_s8 = scalar_lea.vmem [#allocation4], %s934_s20  ;;  %v366_v26 = vrot.slane %v294_v15, 3 }
  0x70   : > { %v322_v16 = vld [vmem:[%s321_s0] sm:$0x1]  ;;  %s349_s1 = sld [smem:[#allocation3 + %s348_s21]]  ;;  %s330_s7 = scalar_lea.vmem [#allocation4], %s938_s28 }
  0x71   : > { %v327_v17 = vld [vmem:[%s326_s8] sm:$0x1]  ;;  %s1034_s19 = sld [smem:[#allocation15_spill]]  ;;  %v323_v22 = vmax.f32 %v318_v13, %v322_v16  ;;  %s335_s3 = scalar_lea.vmem [#allocation4], %s943_s17  ;;  %v383_v33 = vsel %vm382_vm4, %v381_v27, %v366_v26 }
  0x72   : > { %s118_s5 = sand.u32 1, %s1033_s12   ;;  %v331_v18 = vld [vmem:[%s330_s7] sm:$0x1]  ;;  %s1035_s26 = sld [smem:[#allocation27_spill]] }
  0x73   : > { %v332_v20 = vmax.f32 %v327_v17, %v331_v18  ;;  %v336_v23 = vld [vmem:[%s335_s3] sm:$0x1]  ;;  %s517_s11 = sshll.u32 %s118_s5, 3  ;;  %s340_s6 = scalar_lea.vmem [#allocation4], %s339_s25  ;;  %v369_v31 = vrot.slane %v323_v22, 2 }
  0x74   : > { %v341_v25 = vld [vmem:[%s340_s6] sm:$0x1]  ;;  %s345_s23 = scalar_lea.vmem [#allocation4], %s949_s10  ;;  %s120_s15 = scalar_lea.vmem [#allocation7], %s517_s11 }
  0x75   : > { %v337_v24 = vmax.f32 %v332_v20, %v336_v23  ;;  %v346_v29 = vld [vmem:[%s345_s23] sm:$0x1]  ;;  %s402_s16 = sshll.u32 %s120_s15, 4  ;;  %v385_v35 = vsel %vm384_vm5, %v383_v33, %v369_v31  ;;  %s390_s24 = scalar_lea.sflag [#allocation6], %s118_s5  ;;  %s403_s16 = int_to_ptr.vmem [resolvable:$true] %s402_s16 }
  0x76   : > { %s350_s13 = scalar_lea.vmem [#allocation4], %s349_s1 }
  0x77   : > { %s519_s22 = sshll.u32 %s1034_s19, 3  ;;  %v342_v28 = vmax.f32 %v337_v24, %v341_v25  ;;  %v351_v30 = vld [vmem:[%s350_s13] sm:$0x1] }
  0x78   : > { %s400_s27 = scalar_lea.hbm %s1035_s26, %s519_s22  ;;  %s637_s30 = scalar_lea.hbm %s1035_s26, 16 }
  0x79   : > { %v347_v32 = vmax.f32 %v342_v28, %v346_v29  ;;  %s404_s28 = sshll.u32 %s400_s27, 4  ;;  %s405_s28 = int_to_ptr.hbm [resolvable:$true] %s404_s28 }
  0x7a   : > { %s631_s29 = sshra.s32 %s405_s28, 4  ;;  %s632_s29 = int_to_ptr.hbm [resolvable:$true] %s631_s29 }
  0x7b   : > { %v352_v34 = vmax.f32 %v347_v32, %v351_v30  ;;  %s633_s18 = scalar_lea.hbm %s632_s29, 8  ;;  %p638_p2 = scmp.lt.s32.totalorder %s632_s29, %s1035_s26 }
  0x7c   : > { %p634_p13 = scmp.ne.s32.totalorder %s632_s29, %s633_s18  ;;  %p639_p3 = scmp.lt.s32.totalorder %s637_s30, %s633_s18 }
  0x7d   : > { %v372_v36 = vrot.slane %v352_v34, 1 }
  0x7e   : > { %p635_p0 = pnand %p634_p13, %p747_p5  ;;  %p640_p4 = por %p639_p3, %p638_p2 }
  0x7f   : > { %v387_v37 = vsel %vm386_vm6, %v385_v35, %v372_v36 }
  0x80   : > { %388 = vst [vmem:[%s120_s15] sm:$0xff] %v387_v37  ;;  %p636_p1 = pneg %p635_p0 }
  0x82   : > { %p641_p7 = pnand %p640_p4, %p636_p1 }
  0x84   : > { %644 = shalt.err (!%p641_p7)
}
  0x85   : > { %526 = dma.vmem_to_hbm [thread:$0]  (%p747_p5), %s403_s16, 128, %s405_s28, %s390_s24  }
  0x86 PF: > { %s1037_s12 = sld [smem:[#allocation14_spill]] }
  0x87   : > { %s1038_s21 = sld [smem:[#allocation11_spill]] }
  0x8c   : > { %p538_p8 = scmp.ge.s32.totalorder %s1037_s12, 2 }
  0x8d   : > { %s416_s0 = sand.u32 1, %s1038_s21  }
  0x8e   : > { %p533_p9 = pnand %p538_p8, %p751_p6  ;;  %s417_s8 = scalar_lea.sflag [#allocation6], %s416_s0 }
  0x90   : > { %p534_p10 = pneg %p533_p9 }
  0x92   : > { %668 = dma.done.wait (%p534_p10), %s417_s8, 128  }
  0x93   : > { %670 = vsyncadd (%p534_p10), %s417_s8, 4294967168  ;;  %s1040_s16 = sld [smem:[#allocation16_spill]] }
  0x94   : > { %s1041_s13 = sld [smem:[#allocation12_spill]] }
  0x95   : > { %s1042_s14 = sld [smem:[#allocation13_spill]] }
  0x96   : > { %s1043_s15 = sld [smem:[#allocation17_spill]] }
  0x99   : > { %p21_p11 = scmp.ge.s32.totalorder %s1040_s16, 4  }
  0x9b   :  { %23 = sbr.rel (!%p21_p11) target bundleno = 11 (0xb), region = 109 }
  0xa0   :  { %423 = vsyncpa [#allocation5], 1 }
  0xa1   :  { %425 = vsyncpa [#allocation5 + $0x1], 1 }
  0xa2   :  { %426 = vsyncpa [#allocation6], 1 }
  0xa3   :  { %428 = vsyncpa [#allocation6 + $0x1], 1 }

</bundles_post_ra>
